<compile_context>
chip_gen: v7x
topology: tpu7x:2x2x1
jax: 0.10.0
libtpu: 0.0.40
codegen_flags: <defaults>
</compile_context>

<pallas_src>
import functools

import jax
import jax.numpy as jnp
from jax.experimental import pallas as pl
from jax.experimental.pallas import tpu as pltpu


def _round_up(n: int, m: int) -> int:
    return ((n + m - 1) // m) * m


def _layer_norm_kernel(x_ref, gamma_ref, beta_ref, o_ref, *, eps: float, d: int):
    # x_ref: (TR, D) lane-dense tile of rows; gamma_ref / beta_ref: (1, D) resident.
    x = x_ref[...].astype(jnp.float32)

    # Fused single-pass moments: both reductions issue back-to-back on the
    # XLUs and the tile is swept through the vregs only once.
    s = jnp.sum(x, axis=-1, keepdims=True)
    sq = jnp.sum(x * x, axis=-1, keepdims=True)
    mean = s * (1.0 / d)
    # torch.std() default is the unbiased estimator -> divide by (D - 1).
    # One-pass form E[x^2] - mean^2; guarded against tiny negative values from
    # cancellation (fine in f32 for activation-scale inputs).
    var = (sq - d * (mean * mean)) * (1.0 / (d - 1))
    var = jnp.maximum(var, 0.0)
    std = jnp.sqrt(var)

    # Exact reciprocal on the narrow (TR, 1) column, then a wide broadcast
    # multiply on the VPU -- instead of a (TR, D)-wide divide.
    inv = 1.0 / (std + eps)                       # eps added to std, per module
    y = (x - mean) * inv

    gamma = gamma_ref[...].astype(jnp.float32)
    beta = beta_ref[...].astype(jnp.float32)
    o_ref[...] = (gamma * y + beta).astype(o_ref.dtype)


def layer_norm(x, gamma, beta, *, eps=1e-6, row_tile=2048,
               max_tile_bytes=4 * 1024 * 1024):
    """LayerNorm over the last dim of x (any leading shape), matching the
    PyTorch module's forward (unbiased std, eps added to std, affine a2/b2)."""
    orig_shape = x.shape
    D = orig_shape[-1]

    # Flatten all leading dims -> lane-dense (rows, D) view. No row padding /
    # post-slice: Pallas masks the partial last block itself.
    x2 = x.reshape(-1, D)
    rows = x2.shape[0]

    itemsize = jnp.dtype(x2.dtype).itemsize
    # Sublane packing: 8 rows/vreg for f32, 16 for bf16, 32 for int8/fp8.
    sub = max(8, 32 // itemsize)

    # Row-tile size: as large as possible under max_tile_bytes per tile so the
    # double-buffered x/out tiles stay comfortably inside scoped VMEM.
    cap_rows = max(sub, ((max_tile_bytes // (D * itemsize)) // sub) * sub)
    tr = min(row_tile, cap_rows)
    # Ensure >= 2 grid steps when possible so v7x can shard the parallel axis
    # across both of its TensorCores (neutral on single-TC v5e/v6e).
    if rows > sub:
        tr = min(tr, _round_up(pl.cdiv(rows, 2), sub))
    tr = max(sub, (tr // sub) * sub)

    grid = (pl.cdiv(rows, tr),)

    # Actual VMEM footprint: 2 double-buffered (tr, D) tiles (x + out) plus the
    # resident gamma/beta rows, with 2 MiB slack. Capped at 32 MiB so we never
    # request v7x's entire 64 MiB physical VMEM.
    tile_bytes = tr * D * itemsize
    vmem_need = 4 * tile_bytes + 4 * D * 4 + (2 << 20)
    vmem_limit = int(min(32 * 1024 * 1024, max(vmem_need, 4 * 1024 * 1024)))

    gamma2 = gamma.reshape(1, D)
    beta2 = beta.reshape(1, D)

    kernel = functools.partial(_layer_norm_kernel, eps=eps, d=D)

    out2 = pl.pallas_call(
        kernel,
        out_shape=jax.ShapeDtypeStruct((rows, D), x2.dtype),
        grid_spec=pltpu.PrefetchScalarGridSpec(
            num_scalar_prefetch=0,
            grid=grid,
            in_specs=[
                pl.BlockSpec((tr, D), lambda i: (i, 0)),   # x row tile
                pl.BlockSpec((1, D), lambda i: (0, 0)),    # gamma (VMEM-resident)
                pl.BlockSpec((1, D), lambda i: (0, 0)),    # beta  (VMEM-resident)
            ],
            out_specs=pl.BlockSpec((tr, D), lambda i: (i, 0)),
        ),
        compiler_params=pltpu.CompilerParams(
            dimension_semantics=("parallel",),
            vmem_limit_bytes=vmem_limit,
        ),
    )(x2, gamma2, beta2)

    return out2.reshape(orig_shape)


def _reference(x, gamma, beta, eps):
    mean = x.mean(-1, keepdims=True)
    std = jnp.sqrt(jnp.var(x, axis=-1, keepdims=True, ddof=1))  # torch.std (unbiased)
    return gamma * (x - mean) / (std + eps) + beta


if __name__ == "__main__":
    d_model = 512          # features = d_model = 512 in the reference script
    B, S = 2, 8
    eps = 1e-6

    key = jax.random.PRNGKey(0)
    kx, kg, kb = jax.random.split(key, 3)
    x = jax.random.normal(kx, (B, S, d_model), dtype=jnp.float32)
    # Module init is a2 = ones, b2 = zeros; perturb so the affine path is exercised.
    gamma = 1.0 + 0.1 * jax.random.normal(kg, (d_model,), dtype=jnp.float32)
    beta = 0.1 * jax.random.normal(kb, (d_model,), dtype=jnp.float32)

    out = layer_norm(x, gamma, beta, eps=eps)
    out = jax.block_until_ready(out)

    ref = _reference(x, gamma, beta, eps)
    assert out.shape == (B, S, d_model)
    assert jnp.allclose(out, ref, atol=1e-5, rtol=1e-5), float(
        jnp.max(jnp.abs(out - ref)))

    print("KERNEL_OK")
</pallas_src>

<mosaic_0001>
module attributes {stable_mosaic.version = 11 : i64} {
  func.func @_layer_norm_kernel(%arg0: i32, %arg1: memref<8x512xf32, #tpu.memory_space<vmem>>, %arg2: memref<1x512xf32, #tpu.memory_space<vmem>>, %arg3: memref<1x512xf32, #tpu.memory_space<vmem>>, %arg4: memref<8x512xf32, #tpu.memory_space<vmem>>) attributes {dimension_semantics = [#tpu.dimension_semantics<parallel>], iteration_bounds = array<i64: 2>, scalar_prefetch = 0 : i64, scratch_operands = 0 : i64, tpu.core_type = #tpu.core_type<tc>, window_params = [{transform_indices = @transform_0, window_bounds = array<i64: 8, 512>}, {pipeline_mode = #tpu.pipeline_mode<synchronous>, transform_indices = @transform_1, window_bounds = array<i64: 1, 512>}, {pipeline_mode = #tpu.pipeline_mode<synchronous>, transform_indices = @transform_2, window_bounds = array<i64: 1, 512>}, {transform_indices = @transform_3, window_bounds = array<i64: 8, 512>}]} {
    %c0 = arith.constant 0 : index
    %c0_0 = arith.constant 0 : index
    %0 = vector.load %arg1[%c0, %c0_0] : memref<8x512xf32, #tpu.memory_space<vmem>>, vector<8x512xf32>
    %cst = arith.constant dense<0.000000e+00> : vector<8xf32>
    %1 = vector.multi_reduction <add>, %0, %cst [1] : vector<8x512xf32> to vector<8xf32>
    %2 = vector.shape_cast %1 : vector<8xf32> to vector<8x1xf32>
    %3 = arith.mulf %0, %0 : vector<8x512xf32>
    %cst_1 = arith.constant dense<0.000000e+00> : vector<8xf32>
    %4 = vector.multi_reduction <add>, %3, %cst_1 [1] : vector<8x512xf32> to vector<8xf32>
    %5 = vector.shape_cast %4 : vector<8xf32> to vector<8x1xf32>
    %cst_2 = arith.constant 0.001953125 : f32
    %6 = vector.broadcast %cst_2 : f32 to vector<8x1xf32>
    %7 = arith.mulf %2, %6 : vector<8x1xf32>
    %8 = arith.mulf %7, %7 : vector<8x1xf32>
    %cst_3 = arith.constant 5.120000e+02 : f32
    %9 = vector.broadcast %cst_3 : f32 to vector<8x1xf32>
    %10 = arith.mulf %9, %8 : vector<8x1xf32>
    %11 = arith.subf %5, %10 : vector<8x1xf32>
    %cst_4 = arith.constant 0.00195694715 : f32
    %12 = vector.broadcast %cst_4 : f32 to vector<8x1xf32>
    %13 = arith.mulf %11, %12 : vector<8x1xf32>
    %cst_5 = arith.constant 0.000000e+00 : f32
    %14 = vector.broadcast %cst_5 : f32 to vector<8x1xf32>
    %15 = arith.maximumf %13, %14 : vector<8x1xf32>
    %16 = math.sqrt %15 : vector<8x1xf32>
    %cst_6 = arith.constant 9.99999997E-7 : f32
    %17 = vector.broadcast %cst_6 : f32 to vector<8x1xf32>
    %18 = arith.addf %16, %17 : vector<8x1xf32>
    %cst_7 = arith.constant 1.000000e+00 : f32
    %19 = vector.broadcast %cst_7 : f32 to vector<8x1xf32>
    %20 = arith.divf %19, %18 : vector<8x1xf32>
    %21 = vector.broadcast %7 : vector<8x1xf32> to vector<8x512xf32>
    %22 = arith.subf %0, %21 : vector<8x512xf32>
    %23 = vector.broadcast %20 : vector<8x1xf32> to vector<8x512xf32>
    %24 = arith.mulf %22, %23 : vector<8x512xf32>
    %c0_8 = arith.constant 0 : index
    %c0_9 = arith.constant 0 : index
    %25 = vector.load %arg2[%c0_8, %c0_9] : memref<1x512xf32, #tpu.memory_space<vmem>>, vector<1x512xf32>
    %c0_10 = arith.constant 0 : index
    %c0_11 = arith.constant 0 : index
    %26 = vector.load %arg3[%c0_10, %c0_11] : memref<1x512xf32, #tpu.memory_space<vmem>>, vector<1x512xf32>
    %27 = vector.broadcast %25 : vector<1x512xf32> to vector<8x512xf32>
    %28 = arith.mulf %27, %24 : vector<8x512xf32>
    %29 = vector.broadcast %26 : vector<1x512xf32> to vector<8x512xf32>
    %30 = arith.addf %28, %29 : vector<8x512xf32>
    %c0_12 = arith.constant 0 : index
    %c0_13 = arith.constant 0 : index
    %31 = vector.load %arg4[%c0_12, %c0_13] : memref<8x512xf32, #tpu.memory_space<vmem>>, vector<8x512xf32>
    tpu.vector_store %arg4[%c0_12, %c0_13], %30 {strides = array<i32>} : memref<8x512xf32, #tpu.memory_space<vmem>>, vector<8x512xf32>,
    return
  }
  func.func @transform_0(%arg0: i32) -> (i32, i32) {
    %c0_i32 = arith.constant 0 : i32
    %c0_i32_0 = arith.constant 0 : i32
    return %arg0, %c0_i32 : i32, i32
  }
  func.func @transform_1(%arg0: i32) -> (i32, i32) {
    %c0_i32 = arith.constant 0 : i32
    %c0_i32_0 = arith.constant 0 : i32
    %c0_i32_1 = arith.constant 0 : i32
    return %c0_i32, %c0_i32_0 : i32, i32
  }
  func.func @transform_2(%arg0: i32) -> (i32, i32) {
    %c0_i32 = arith.constant 0 : i32
    %c0_i32_0 = arith.constant 0 : i32
    %c0_i32_1 = arith.constant 0 : i32
    return %c0_i32, %c0_i32_0 : i32, i32
  }
  func.func @transform_3(%arg0: i32) -> (i32, i32) {
    %c0_i32 = arith.constant 0 : i32
    %c0_i32_0 = arith.constant 0 : i32
    return %arg0, %c0_i32 : i32, i32
  }
}

</mosaic_0001>

<bundles_post_ra>
// kernel: tpu_custom_call.1
= control target key start
LH: loop header
LB: loop body
LE: loop exit
PB: predicated region body
PF: predicated region fallthrough
CT: control target
= control target key end

     0   :  { %8 = vsyncpa [#allocation3], 0  ;;  %s833_s0 = inlined_call_operand.hbm [shape: f32[16,512], index: 0, kind: input, shape index: {}]   ;;  %s834_s1 = inlined_call_operand.hbm [shape: f32[1,512], index: 1, kind: input, shape index: {}]   ;;  %s835_s2 = inlined_call_operand.vmem [shape: f32[1,512], index: 2, kind: input, shape index: {}]   ;;  %s836_s3 = inlined_call_operand.hbm [shape: f32[16,512], index: 3, kind: output, shape index: {}]  }
   0x1   :  { %10 = vsyncpa [#allocation3 + $0x1], 0 }
   0x2   :  { %11 = vsyncpa [#allocation6], 0 }
   0x3   :  { %12 = vsyncpa [#allocation4], 0 }
   0x4   :  { %14 = vsyncpa [#allocation4 + $0x1], 0  ;;  %s625_s12 = smov 0   ;;  %s627_s13 = smov 0  }
   0x5   :  { %s629_s14 = smov 0   ;;  %s631_s15 = smov 0  }
   0x6 LB: > { %s646_s16 = sadd.s32 4294967295, %s600_s15   ;;  %s393_s17 = sadd.s32 4294967294, %s600_s15   ;;  %s600_s15 = sphi %s631_s15, %s860_s15   ;;  %s596_s14 = sphi %s629_s14, %s859_s14   ;;  %s592_s13 = sphi %s627_s13, %s858_s13   ;;  %s588_s12 = sphi %s625_s12, %s857_s12  }
   0x7   : > { %p40_p0 = scmp.ne.s32.totalorder %s592_s13, %s588_s12  ;;  %p837_p1 = scmp.eq.s32.totalorder %s646_s16, 0 }
   0x8   : > { %p112_p3 = scmp.eq.s32.totalorder %s393_s17, 1  ;;  %p394_p5 = scmp.ge.s32.totalorder %s600_s15, 1 }
   0x9   : > { %p655_p4 = por %p837_p1, %p40_p0  ;;  %p119_p7 = scmp.lt.s32.totalorder %s600_s15, 3 }
   0xa   : > { %p660_p6 = por %p112_p3, %p40_p0  ;;  %s602_s21 = smov [#allocation5]  }
   0xb   : > { %s840_s18 = scalar_select %p655_p4, 1, 0 }
   0xc   : > { %s841_s19 = scalar_select %p660_p6, 1, 0 }
   0xd   : > { %p665_p8 = pnand %p394_p5, %p119_p7  ;;  %s132_s22 = sshll.u32 %s602_s21, 4  ;;  %s133_s22 = int_to_ptr.vmem [resolvable:$true] %s132_s22 }
   0xe   : > { %s673_s23 = sadd.s32 1, %s600_s15   ;;  %s27_s27 = sadd.s32 1, %s596_s14 }
   0xf   : > { %s842_s20 = scalar_select %p665_p8, 1, 0 }
  0x10   : > { %p419_p10 = pneg %p665_p8  ;;  %s24_s25 = ssub.s32 %s600_s15, %s673_s23 }
  0x11   : > { %p683_p12 = scmp.eq.s32.totalorder %s24_s25, 0  ;;  %s472_s30 = scalar_lea.hbm %s834_s1, 64 }
  0x12   : > { %p677_p11 = pnand %p419_p10, %p837_p1  ;;  %p473_p0 = scmp.ne.s32.totalorder %s834_s1, %s472_s30 }
  0x13   : > { %s844_s26 = scalar_select %p683_p12, 1, 0 }
  0x14   : > { %p474_p3 = pneg %p677_p11  ;;  %p479_p10 = scmp.lt.u32.totalorder %s472_s30, %s834_s1 }
  0x16   : > { %p475_p5 = pnand %p474_p3, %p473_p0 }
  0x18   : > { %p476_p7 = pneg %p475_p5 }
  0x1a   : > { %p481_p9 = pnand %p479_p10, %p476_p7 }
  0x1c   : > { %484 = shalt.err (!%p481_p9)
}
  0x1d   : > { %s485_s8 = scalar_lea.vmem %s133_s22, 64  ;;  %p493_p6 = scmp.lt.s32.totalorder %s133_s22, %s133_s22 }
  0x1e   : > { %p486_p1 = scmp.ne.s32.totalorder %s133_s22, %s485_s8  ;;  %p494_p4 = scmp.lt.s32.totalorder %s485_s8, %s485_s8 }
  0x20   : > { %p488_p2 = pnand %p486_p1, %p474_p3  ;;  %p495_p8 = por %p494_p4, %p493_p6 }
  0x22   : > { %p489_p13 = pneg %p488_p2 }
  0x24   : > { %p496_p12 = pnand %p495_p8, %p489_p13 }
  0x26   : > { %499 = shalt.err (!%p496_p12)
}
  0x27   : > { %422 = dma.hbm_to_vmem [thread:$0]  (!%p677_p11), %s834_s1, 64, %s133_s22, [#allocation6]  }
  0x28   : > { %p845_p1 = scmp.ne.s32.totalorder %s844_s26, 0  ;;  %p35_p2 = scmp.eq.s32.totalorder %s600_s15, 0 }
  0x29   : > { %p846_p4 = scmp.ne.s32.totalorder %s596_s14, %s592_s13  ;;  %p847_p6 = scmp.eq.s32.totalorder %s646_s16, 1 }
  0x2a   : > { %s709_s11 = scalar_select %p845_p1, %s596_s14, %s27_s27  }
  0x2b   : > { %p717_p8 = por %p847_p6, %p846_p4  ;;  %p432_p9 = scmp.lt.s32.totalorder %s600_s15, 2 }
  0x2c   : > { %s146_s21 = sand.u32 1, %s596_s14   ;;  %p849_p12 = pmov %p846_p4 }
  0x2d   : > { %s397_s24 = sshll.u32 %s146_s21, 5  ;;  %s409_s25 = sshll.u32 %s600_s15, 9 }
  0x2e   : > { %p36_p13 = por %p35_p2, %p849_p12  ;;  %s730_s22 = scalar_lea.hbm %s833_s0, %s409_s25 }
  0x2f   : > { %s150_s26 = scalar_lea.vmem [#allocation2], %s397_s24  ;;  %s147_s4 = scalar_lea.sflag [#allocation3], %s146_s21 }
  0x30   : > { %s158_s27 = sshll.u32 %s150_s26, 4  ;;  %p732_p11 = pnand %p432_p9, %p36_p13  ;;  %s736_s27 = int_to_ptr.vmem [resolvable:$true] %s158_s27 }
  0x31   : > { %s500_s5 = scalar_lea.hbm %s730_s22, 512  ;;  %s505_s8 = scalar_lea.hbm %s833_s0, 1024 }
  0x32   : > { %p501_p0 = scmp.ne.s32.totalorder %s730_s22, %s500_s5  ;;  %p502_p3 = pneg %p732_p11 }
  0x33   : > { %p506_p10 = scmp.lt.u32.totalorder %s730_s22, %s833_s0  ;;  %p507_p1 = scmp.lt.u32.totalorder %s505_s8, %s500_s5 }
  0x34   : > { %p503_p5 = pnand %p502_p3, %p501_p0  ;;  %p509_p4 = scmp.lt.u32.totalorder %s500_s5, %s730_s22 }
  0x35   : > { %p508_p2 = por %p507_p1, %p506_p10 }
  0x36   : > { %p504_p7 = pneg %p503_p5 }
  0x37   : > { %p510_p6 = por %p509_p4, %p508_p2 }
  0x39   : > { %p511_p9 = pnand %p510_p6, %p504_p7 }
  0x3b   : > { %514 = shalt.err (!%p511_p9)
}
  0x3c   : > { %s515_s21 = scalar_lea.vmem %s736_s27, 512  ;;  %s603_s24 = smov [#allocation2]  }
  0x3d   : > { %p516_p12 = scmp.ne.s32.totalorder %s736_s27, %s515_s21  ;;  %s520_s25 = sshll.u32 %s603_s24, 4  ;;  %s521_s25 = int_to_ptr.vmem [resolvable:$false] %s520_s25 }
  0x3e   : > { %s522_s28 = scalar_lea.vmem %s521_s25, 1024  ;;  %p523_p5 = scmp.lt.s32.totalorder %s736_s27, %s521_s25 }
  0x3f   : > { %p518_p13 = pnand %p516_p12, %p502_p3  ;;  %p524_p10 = scmp.lt.s32.totalorder %s522_s28, %s515_s21 }
  0x41   : > { %p519_p0 = pneg %p518_p13  ;;  %p525_p1 = por %p524_p10, %p523_p5 }
  0x43   : > { %p526_p2 = pnand %p525_p1, %p519_p0 }
  0x45   : > { %529 = shalt.err (!%p526_p2)
}
  0x46   : > { %426 = dma.hbm_to_vmem [thread:$0]  (!%p732_p11), %s730_s22, 512, %s736_s27, %s147_s4  }
  0x47   : > { %p851_p7 = scmp.ne.s32.totalorder %s842_s20, 0 }
  0x48   : > { %s766_s29 = sand.u32 (!%p851_p7), 1, %s592_s13   ;;  %p852_p3 = scmp.ne.s32.totalorder (!%p851_p7), %s840_s18, 0 }
  0x49   : > { %167 = sbr.rel (%p851_p7) target bundleno = 294 (0x126), region = 32  ;;  %s401_s26 = sshll.u32 (!%p851_p7), %s766_s29, 5 }
  0x4a   : > { %s170_s5 = scalar_lea.sflag (!%p851_p7), [#allocation3], %s766_s29  ;;  %s173_s6 = scalar_lea.vmem (!%p851_p7), [#allocation2], %s401_s26 }
  0x50   : > { %575 = dma.done.wait (%p852_p3), %s170_s5, 512  }
  0x51   : > { %577 = vsyncadd (%p852_p3), %s170_s5, 4294966784  ;;  %p853_p11 = scmp.eq.s32.totalorder %s646_s16, 0 }
  0x53   : > { %579 = dma.done.wait (%p853_p11), [#allocation6], 64   ;;  %p854_p4 = pmov %p853_p11 }
  0x54   : > { %v200_v0 = vld [vmem:[%s173_s6] sm:$0xff]  ;;  %v201_v1 = vld [vmem:[%s173_s6 + $0x8] sm:$0xff]  ;;  %v202_v2 = vld [vmem:[%s173_s6 + $0x10] sm:$0xff]  ;;  %v245_v26 = vlaneseq  ;;  %s410_s22 = sshll.u32 %s646_s16, 9  ;;  %s199_s27 = scalar_lea.vmem [#allocation7], %s401_s26 }
  0x55   : > { %581 = vsyncadd (%p854_p4), [#allocation6], 4294967232  ;;  %v204_v3 = vadd.f32 %v201_v1, %v200_v0  ;;  %v209_v4 = vmul.f32 %v200_v0, %v200_v0  ;;  %v210_v5 = vmul.f32 %v201_v1, %v201_v1  ;;  %v211_v6 = vmul.f32 %v202_v2, %v202_v2  ;;  %v203_v7 = vld [vmem:[%s173_s6 + $0x18] sm:$0xff]  ;;  %v242_v34 = vld [vmem:[#allocation5] sm:$0xf]  ;;  %s313_s30 = sshll.u32 %s199_s27, 4  ;;  %s789_s8 = scalar_lea.hbm %s836_s3, %s410_s22  ;;  %s791_s30 = int_to_ptr.vmem [resolvable:$true] %s313_s30 }
  0x56   : > { %v212_v9 = vmul.f32 %v203_v7, %v203_v7  ;;  %v246_v29 = vshrl.u32 %v245_v26, 7  ;;  %v243_v35 = vld [vmem:[%s835_s2] sm:$0xf]  ;;  %s299_s16 = scalar_lea.sflag [#allocation4], %s766_s29  ;;  %s530_s9 = scalar_lea.vmem %s791_s30, 512 }
  0x57   : > { %v205_v8 = vadd.f32 %v204_v3, %v202_v2  ;;  %v213_v10 = vadd.f32 %v210_v5, %v209_v4  ;;  %p531_p6 = scmp.ne.s32.totalorder %s791_s30, %s530_s9  ;;  %s604_s10 = smov [#allocation7]  }
  0x58   : > { %v247_v30 = vsub.s32 0, %v246_v29  ;;  %v251_v31 = vsub.s32 1, %v246_v29  ;;  %v255_v32 = vsub.s32 2, %v246_v29  ;;  %v259_v33 = vsub.s32 3, %v246_v29  ;;  %s534_s21 = sshll.u32 %s604_s10, 4  ;;  %s535_s21 = int_to_ptr.vmem [resolvable:$false] %s534_s21 }
  0x59   : > { %v206_v11 = vadd.f32 %v205_v8, %v203_v7  ;;  %v214_v12 = vadd.f32 %v213_v10, %v211_v6  ;;  %p532_p9 = pnand %p531_p6, %p717_p8  ;;  %s536_s24 = scalar_lea.vmem %s535_s21, 1024 }
  0x5a   : > { %v248_v36 = vrot.slane %v242_v34, %v247_v30  ;;  %v252_v37 = vrot.slane %v242_v34, %v251_v31  ;;  %v256_v38 = vrot.slane %v242_v34, %v255_v32  ;;  %v260_v39 = vrot.slane %v242_v34, %v259_v33  ;;  %p537_p13 = scmp.lt.s32.totalorder %s791_s30, %s535_s21  ;;  %p538_p0 = scmp.lt.s32.totalorder %s536_s24, %s530_s9 }
  0x5b   : > { %207 = vadd.xlane.f32.xlu0 %v206_v11  ;;  %v215_v13 = vadd.f32 %v214_v12, %v212_v9  ;;  %v273_v45 = vrot.slane %v243_v35, %v247_v30  ;;  %v277_v46 = vrot.slane %v243_v35, %v251_v31  ;;  %v281_v47 = vrot.slane %v243_v35, %v255_v32  ;;  %p533_p12 = pneg %p532_p9 }
  0x5c   : > { %v285_v48 = vrot.slane %v243_v35, %v259_v33  ;;  %p539_p5 = por %p538_p0, %p537_p13 }
  0x5e   : > { %p540_p10 = pnand %p539_p5, %p533_p12 }
  0x5f   : > { %216 = vadd.xlane.f32.xlu0 %v215_v13 }
  0xe8   : > { %v208_v14 = vpop.xlane.xlu0 %207 }
  0xe9   : > { %v218_v15 = vmul.f32 0.001953125, %v208_v14 }
  0xeb   : > { %v219_v16 = vmul.f32 %v218_v15, %v218_v15  ;;  %v234_v40 = vsub.f32 %v200_v0, %v218_v15  ;;  %v235_v41 = vsub.f32 %v201_v1, %v218_v15  ;;  %v236_v42 = vsub.f32 %v202_v2, %v218_v15 }
  0xec   : > { %v217_v17 = vpop.xlane.xlu0 %216  ;;  %v237_v43 = vsub.f32 %v203_v7, %v218_v15 }
  0xed   : > { %v220_v18 = vmul.f32 512.0, %v219_v16 }
  0xef   : > { %v221_v19 = vsub.f32 %v217_v17, %v220_v18 }
  0xf1   : > { %v222_v20 = vmul.f32 0.0019569471, %v221_v19 }
  0xf3   : > { %v223_v21 = vmax.f32 %v222_v20, 0.0 }
  0xf5   : > { %468 = vrsqrt.f32 %v223_v21  ;;  %vm226_vm0 = vcmp.eq.f32.partialorder %v223_v21, inf  ;;  %v229_v24 = vand.u32 2147483648, %v223_v21  ;;  %vm228_vm1 = vcmp.eq.f32.partialorder %v223_v21, 0.0 }
  0xff   : > { %v469_v22 = vpop.eup %468 }
 0x100   : > { %v225_v23 = vmul.f32 %v469_v22, %v223_v21 }
 0x102   : > { %v227_v25 = vsel %vm226_vm0, %v223_v21, %v225_v23 }
 0x103   : > { %v230_v27 = vsel %vm228_vm1, %v229_v24, %v227_v25 }
 0x104   : > { %v231_v28 = vadd.f32 1e-06, %v230_v27 }
 0x106   : > { %470 = vrcp.f32 %v231_v28 }
 0x110   : > { %v471_v44 = vpop.eup %470 }
 0x111   : > { %v238_v49 = vmul.f32 %v471_v44, %v234_v40  ;;  %v239_v50 = vmul.f32 %v471_v44, %v235_v41  ;;  %v240_v51 = vmul.f32 %v471_v44, %v236_v42  ;;  %v241_v52 = vmul.f32 %v471_v44, %v237_v43 }
 0x113   : > { %v265_v53 = vmul.f32 %v248_v36, %v238_v49  ;;  %v266_v54 = vmul.f32 %v252_v37, %v239_v50  ;;  %v267_v55 = vmul.f32 %v256_v38, %v240_v51  ;;  %v268_v56 = vmul.f32 %v260_v39, %v241_v52 }
 0x115   : > { %v290_v57 = vadd.f32 %v273_v45, %v265_v53  ;;  %v291_v58 = vadd.f32 %v277_v46, %v266_v54  ;;  %v292_v59 = vadd.f32 %v281_v47, %v267_v55  ;;  %v293_v60 = vadd.f32 %v285_v48, %v268_v56 }
 0x117   : > { %294 = vst [vmem:[%s199_s27] sm:$0xff] %v290_v57  ;;  %295 = vst [vmem:[%s199_s27 + $0x8] sm:$0xff] %v291_v58 }
 0x118   : > { %296 = vst [vmem:[%s199_s27 + $0x10] sm:$0xff] %v292_v59  ;;  %297 = vst [vmem:[%s199_s27 + $0x18] sm:$0xff] %v293_v60 }
 0x119   : > { %543 = shalt.err (!%p540_p10)
}
 0x11a   : > { %s544_s25 = scalar_lea.hbm %s789_s8, 512  ;;  %s548_s26 = scalar_lea.hbm %s836_s3, 1024 }
 0x11b   : > { %p545_p1 = scmp.ne.s32.totalorder %s789_s8, %s544_s25  ;;  %p549_p3 = scmp.lt.u32.totalorder %s789_s8, %s836_s3 }
 0x11c   : > { %p550_p11 = scmp.lt.u32.totalorder %s548_s26, %s544_s25  ;;  %p552_p6 = scmp.lt.u32.totalorder %s544_s25, %s789_s8 }
 0x11d   : > { %p546_p2 = pnand %p545_p1, %p717_p8 }
 0x11e   : > { %p551_p4 = por %p550_p11, %p549_p3 }
 0x11f   : > { %p547_p7 = pneg %p546_p2 }
 0x120   : > { %p553_p9 = por %p552_p6, %p551_p4 }
 0x122   : > { %p554_p12 = pnand %p553_p9, %p547_p7 }
 0x124   : > { %557 = shalt.err (!%p554_p12)
}
 0x125   : > { %417 = dma.vmem_to_hbm [thread:$0]  (%p717_p8), %s791_s30, 512, %s789_s8, %s299_s16  }
 0x126 PF: > { %s325_s18 = sand.u32 1, %s588_s12   ;;  %p855_p13 = scmp.ne.s32.totalorder %s841_s19, 0 }
 0x127   : > { %p856_p0 = scmp.ge.s32.totalorder %s600_s15, 2  ;;  %s326_s20 = scalar_lea.sflag [#allocation4], %s325_s18 }
 0x129   : > { %p428_p5 = pnand %p856_p0, %p855_p13 }
 0x12b   : > { %583 = dma.done.wait (!%p428_p5), %s326_s20, 512  }
 0x12c   : > { %585 = vsyncadd (!%p428_p5), %s326_s20, 4294966784  ;;  %p17_p10 = scmp.ge.s32.totalorder %s673_s23, 4   ;;  %s857_s12 = smov %s592_s13 }
 0x12d   : > { %s858_s13 = smov %s596_s14  ;;  %s859_s14 = smov %s709_s11 }
 0x12e   : > { %s860_s15 = smov %s673_s23  ;;  %19 = sbr.rel (!%p17_p10) target bundleno = 6 (0x6), region = 81 }
 0x135   :  { %331 = vsyncpa [#allocation3], 1 }
 0x136   :  { %333 = vsyncpa [#allocation3 + $0x1], 1 }
 0x137   :  { %334 = vsyncpa [#allocation6], 1 }
 0x138   :  { %335 = vsyncpa [#allocation4], 1 }
 0x139   :  { %337 = vsyncpa [#allocation4 + $0x1], 1 }

</bundles_post_ra>
